<compile_context>
chip_gen: v5e
topology: v5e:2x2
jax: 0.10.0
libtpu: 0.0.40
codegen_flags: <defaults>
</compile_context>

<pallas_src>
import math

import jax
import jax.numpy as jnp
from jax.experimental import pallas as pl
from jax.experimental.pallas import tpu as pltpu


def _freq_enc_kernel(x_ref, tab_ref, o_ref):
    # x_ref  : (1, C_in,  tT, F)          input block (x.dtype)
    # tab_ref: (C_emb, 1, F)              sin/cos table (float32, constant)
    # o_ref  : (1, C_in + C_emb, tT, F)   output block (x.dtype)
    c_in = x_ref.shape[1]
    c_emb = tab_ref.shape[0]
    tt, f = o_ref.shape[2], o_ref.shape[3]

    # Pass-through channels: straight lane-dense copy of the input block.
    o_ref[:, 0:c_in, :, :] = x_ref[...].astype(o_ref.dtype)

    # Embedding channels: cast the small (C_emb, 1, F) table once, then
    # broadcast it along the time (sublane) axis of the output block.
    tab = tab_ref[...].astype(o_ref.dtype)                 # (C_emb, 1, F)
    o_ref[:, c_in:, :, :] = jnp.broadcast_to(tab[None], (1, c_emb, tt, f))


def _choose_time_tile(T, c_in, c_out, F, dtype, budget_bytes=3 << 20):
    """Largest time tile whose (input + output) blocks fit ~budget_bytes.

    Uses the lane-PADDED F (VMEM pads the lane axis to multiples of 128) and
    rounds to the dtype-specific sublane tile so stores stay unmasked.  Pallas
    double-buffers each BlockSpec, so total footprint is ~2x this budget —
    comfortably below the default scoped-VMEM limit on every TPU generation.
    """
    itemsize = jnp.dtype(dtype).itemsize
    sublane = {4: 8, 2: 16, 1: 32}.get(itemsize, 8)
    f_padded = 128 * pl.cdiv(F, 128)
    per_row = (c_in + c_out) * f_padded * itemsize
    tt = max(1, budget_bytes // max(per_row, 1))
    if tt >= T:
        return T                                  # full dim: always legal
    return max(sublane, (tt // sublane) * sublane)


def build_rff_embedding(rff_freq, f_dim):
    """Mirrors FreqEncodingRFF.build_RFF_embedding, channel-major (2N, F), f32."""
    freqs = rff_freq.astype(jnp.float32).reshape(-1, 1)             # (N, 1)
    n = jnp.arange(f_dim, dtype=jnp.float32)[None, :]               # (1, F)
    phase = 2.0 * math.pi * n * freqs                               # (N, F)
    return jnp.concatenate([jnp.sin(phase), jnp.cos(phase)], axis=0)  # (2N, F)


def freq_encoding_rff(x, rff_freq):
    """x: (B, C_in, T, F); rff_freq: (1, N). Returns (B, C_in + 2N, T, F)."""
    B, c_in, T, F = x.shape
    n_freq = rff_freq.size
    c_emb = 2 * n_freq
    c_out = c_in + c_emb

    # Precompute the table once (mirrors the module's __init__); keep float32
    # and shape (2N, 1, F) so the kernel broadcasts along the time/sublane axis.
    table = build_rff_embedding(rff_freq, F).reshape(c_emb, 1, F)

    tt = _choose_time_tile(T, c_in, c_out, F, x.dtype)
    grid = (B, pl.cdiv(T, tt))

    x_spec = pl.BlockSpec((1, c_in, tt, F), lambda b, t: (b, 0, t, 0))
    tab_spec = pl.BlockSpec((c_emb, 1, F), lambda b, t: (0, 0, 0))
    o_spec = pl.BlockSpec((1, c_out, tt, F), lambda b, t: (b, 0, t, 0))

    out_bytes = B * c_out * T * F * jnp.dtype(x.dtype).itemsize
    cost = pl.CostEstimate(
        flops=0,
        transcendentals=0,
        bytes_accessed=x.size * jnp.dtype(x.dtype).itemsize
        + table.size * 4
        + out_bytes,
    )

    return pl.pallas_call(
        _freq_enc_kernel,
        out_shape=jax.ShapeDtypeStruct((B, c_out, T, F), x.dtype),
        grid_spec=pltpu.PrefetchScalarGridSpec(
            num_scalar_prefetch=0,
            grid=grid,
            in_specs=[x_spec, tab_spec],
            out_specs=o_spec,
        ),
        compiler_params=pltpu.CompilerParams(
            dimension_semantics=("parallel", "parallel"),
            # Actual use is ~7 MiB (2x ~3 MiB double-buffered blocks + table);
            # 32 MiB is >= the default scoped limit on v5e/v6e/v7x and leaves
            # plenty of headroom while staying well below physical VMEM.
            vmem_limit_bytes=32 << 20,
        ),
        cost_estimate=cost,
    )(x, table)


def _reference(x, rff_freq):
    # Pure-JAX reference of the intended forward pass.
    B, c_in, T, F = x.shape
    table = build_rff_embedding(rff_freq, F).astype(x.dtype)         # (2N, F)
    emb = jnp.broadcast_to(table[None, :, None, :], (B, table.shape[0], T, F))
    return jnp.concatenate([x, emb], axis=1)


if __name__ == "__main__":
    key = jax.random.PRNGKey(0)
    k_x, k_f = jax.random.split(key)

    # Small shapes consistent with the module: F=1025 (the dim it is
    # "optimized for"), 2 input channels, N=5 -> 12 output channels.
    B, C_IN, T, F_DIM, N = 2, 2, 16, 1025, 5

    x = jax.random.normal(k_x, (B, C_IN, T, F_DIM), dtype=jnp.float32)
    # RFF_freq = 16 * randn([1, N]) (frozen, non-trainable parameter).
    rff_freq = 16.0 * jax.random.normal(k_f, (1, N), dtype=jnp.float32)

    out = freq_encoding_rff(x, rff_freq)
    out = jax.block_until_ready(out)

    ref = _reference(x, rff_freq)
    assert out.shape == (B, C_IN + 2 * N, T, F_DIM), out.shape
    assert jnp.allclose(out, ref, atol=1e-5, rtol=1e-5)

    print("KERNEL_OK")
</pallas_src>

<mosaic_0001>
module attributes {stable_mosaic.version = 11 : i64} {
  func.func @_freq_enc_kernel(%arg0: i32, %arg1: i32, %arg2: memref<1x2x16x1025xf32, #tpu.memory_space<vmem>>, %arg3: memref<10x1x1025xf32, #tpu.memory_space<vmem>>, %arg4: memref<1x12x16x1025xf32, #tpu.memory_space<vmem>>) attributes {dimension_semantics = [#tpu.dimension_semantics<parallel>, #tpu.dimension_semantics<parallel>], iteration_bounds = array<i64: 2, 1>, scalar_prefetch = 0 : i64, scratch_operands = 0 : i64, tpu.core_type = #tpu.core_type<tc>, window_params = [{transform_indices = @transform_0, window_bounds = array<i64: 1, 2, 16, 1025>}, {pipeline_mode = #tpu.pipeline_mode<synchronous>, transform_indices = @transform_1, window_bounds = array<i64: 10, 1, 1025>}, {transform_indices = @transform_2, window_bounds = array<i64: 1, 12, 16, 1025>}]} {
    %c0 = arith.constant 0 : index
    %c0_0 = arith.constant 0 : index
    %c0_1 = arith.constant 0 : index
    %c0_2 = arith.constant 0 : index
    %0 = vector.load %arg2[%c0, %c0_0, %c0_1, %c0_2] : memref<1x2x16x1025xf32, #tpu.memory_space<vmem>>, vector<1x2x16x1025xf32>
    %c0_3 = arith.constant 0 : index
    %c0_4 = arith.constant 0 : index
    %c0_5 = arith.constant 0 : index
    %c0_6 = arith.constant 0 : index
    %1 = vector.load %arg4[%c0_3, %c0_4, %c0_5, %c0_6] : memref<1x12x16x1025xf32, #tpu.memory_space<vmem>>, vector<1x2x16x1025xf32>
    tpu.vector_store %arg4[%c0_3, %c0_4, %c0_5, %c0_6], %0 {strides = array<i32>} : memref<1x12x16x1025xf32, #tpu.memory_space<vmem>>, vector<1x2x16x1025xf32>,
    %c0_7 = arith.constant 0 : index
    %c0_8 = arith.constant 0 : index
    %c0_9 = arith.constant 0 : index
    %2 = vector.load %arg3[%c0_7, %c0_8, %c0_9] : memref<10x1x1025xf32, #tpu.memory_space<vmem>>, vector<10x1x1025xf32>
    %3 = vector.shape_cast %2 : vector<10x1x1025xf32> to vector<1x10x1x1025xf32>
    %4 = vector.shape_cast %3 : vector<1x10x1x1025xf32> to vector<1x10x1x1025xf32>
    %5 = vector.broadcast %4 : vector<1x10x1x1025xf32> to vector<1x10x16x1025xf32>
    %c0_10 = arith.constant 0 : index
    %c2 = arith.constant 2 : index
    %c0_11 = arith.constant 0 : index
    %c0_12 = arith.constant 0 : index
    %6 = vector.load %arg4[%c0_10, %c2, %c0_11, %c0_12] : memref<1x12x16x1025xf32, #tpu.memory_space<vmem>>, vector<1x10x16x1025xf32>
    tpu.vector_store %arg4[%c0_10, %c2, %c0_11, %c0_12], %5 {strides = array<i32>} : memref<1x12x16x1025xf32, #tpu.memory_space<vmem>>, vector<1x10x16x1025xf32>,
    return
  }
  func.func @transform_0(%arg0: i32, %arg1: i32) -> (i32, i32, i32, i32) {
    %c0_i32 = arith.constant 0 : i32
    %c0_i32_0 = arith.constant 0 : i32
    %c0_i32_1 = arith.constant 0 : i32
    return %arg0, %c0_i32, %arg1, %c0_i32_0 : i32, i32, i32, i32
  }
  func.func @transform_1(%arg0: i32, %arg1: i32) -> (i32, i32, i32) {
    %c0_i32 = arith.constant 0 : i32
    %c0_i32_0 = arith.constant 0 : i32
    %c0_i32_1 = arith.constant 0 : i32
    %c0_i32_2 = arith.constant 0 : i32
    return %c0_i32, %c0_i32_0, %c0_i32_1 : i32, i32, i32
  }
  func.func @transform_2(%arg0: i32, %arg1: i32) -> (i32, i32, i32, i32) {
    %c0_i32 = arith.constant 0 : i32
    %c0_i32_0 = arith.constant 0 : i32
    %c0_i32_1 = arith.constant 0 : i32
    return %arg0, %c0_i32, %arg1, %c0_i32_0 : i32, i32, i32, i32
  }
}

</mosaic_0001>

<bundles_post_ra>
// kernel: tpu_custom_call.1
= control target key start
LH: loop header
LB: loop body
LE: loop exit
PB: predicated region body
PF: predicated region fallthrough
CT: control target
= control target key end

     0   :  { %7 = vsyncpa [#allocation3], 0  ;;  %s1672_s0 = inlined_call_operand.hbm [shape: f32[2,2,16,1025], index: 0, kind: input, shape index: {}]   ;;  %s1673_s1 = inlined_call_operand.hbm [shape: f32[10,1,1025], index: 1, kind: input, shape index: {}]   ;;  %s1674_s2 = inlined_call_operand.hbm [shape: f32[2,12,16,1025], index: 2, kind: output, shape index: {}]  }
   0x1   :  { %9 = vsyncpa [#allocation3 + $0x1], 0 }
   0x2   :  { %10 = vsyncpa [#allocation6], 0 }
   0x3   :  { %11 = vsyncpa [#allocation4], 0 }
   0x4   :  { %13 = vsyncpa [#allocation4 + $0x1], 0  ;;  %s1247_s9 = smov 0   ;;  %s1249_s10 = smov 0  }
   0x5   :  { %s1251_s11 = smov 0   ;;  %s1253_s12 = smov 0  }
   0x6   :  { %s1255_s13 = smov 0   ;;  %s1257_s14 = smov 0  }
   0x7 LB: > { %s792_s15 = sadd.s32 4294967295, %s1223_s14   ;;  %s793_s16 = sadd.s32 4294967294, %s1223_s14   ;;  %s1223_s14 = sphi %s1257_s14, %s19_s14   ;;  %s1219_s13 = sphi %s1255_s13, %s1685_s13   ;;  %s1215_s12 = sphi %s1253_s12, %s1684_s12   ;;  %s1211_s11 = sphi %s1251_s11, %s1683_s11   ;;  %s1207_s10 = sphi %s1249_s10, %s1682_s10   ;;  %s1203_s9 = sphi %s1247_s9, %s1681_s9  }
   0x8   : > { %p53_p0 = scmp.ne.s32.totalorder %s1207_s10, %s1203_s9  ;;  %p1281_p1 = scmp.eq.s32.totalorder %s792_s15, 0 }
   0x9   : > { %p1285_p2 = scmp.eq.s32.totalorder %s792_s15, 1  ;;  %p106_p3 = scmp.eq.s32.totalorder %s793_s16, 1 }
   0xa   : > { %p1291_p4 = por %p1281_p1, %p53_p0  ;;  %p794_p5 = scmp.ge.s32.totalorder %s1223_s14, 1 }
   0xb   : > { %p1296_p6 = por %p106_p3, %p53_p0  ;;  %p113_p7 = scmp.lt.s32.totalorder %s1223_s14, 3 }
   0xc   : > { %s124_s23 = sshll.u32 %s1673_s1, 4  ;;  %s1225_s25 = smov [#allocation5]   ;;  %s125_s23 = int_to_ptr.hbm [resolvable:$true] %s124_s23 }
   0xd   : > { %p1304_p8 = pnand %p794_p5, %p113_p7  ;;  %s126_s26 = sshll.u32 %s1225_s25, 4  ;;  %s127_s26 = int_to_ptr.vmem [resolvable:$true] %s126_s26 }
   0xe   : > { %p796_p11 = scmp.ge.s32.totalorder %s1223_s14, 2  ;;  %s1226_s27 = smov 144  }
   0xf   : > { %p996_p9 = pneg %p1304_p8  ;;  %s1227_s28 = smov 9  }
  0x10   : > { %s31_s29 = sadd.s32 1, %s1219_s13  ;;  %s40_s30 = sadd.s32 1, %s1211_s11 }
  0x11   : > { %p997_p10 = pnand %p996_p9, %p1281_p1  ;;  %p33_p12 = scmp.ge.s32.totalorder %s31_s29, 2 }
  0x12   : > { %p47_p13 = scmp.ne.s32.totalorder %s1211_s11, %s1207_s10  ;;  %p48_p0 = scmp.eq.s32.totalorder %s1223_s14, 0 }
  0x13   : > { %999 = dma.hbm_to_vmem [thread:$0]  (!%p997_p10), %s125_s23, 1440, %s127_s26, [#allocation6], %s1226_s27, %s1226_s27, %s1227_s28  }
  0x14   : > { %s1687_s29 = smov (%p33_p12, %s31_s29), 0  ;;  %p49_p3 = por %p48_p0, %p47_p13 }
  0x15   : > { %p1322_p5 = por %p1285_p2, %p47_p13  ;;  %s35_s4 = ssub.s32 %s1219_s13, %s1687_s29 }
  0x16   : > { %p1009_p7 = scmp.lt.s32.totalorder %s1223_s14, 2  ;;  %p38_p9 = scmp.eq.s32.totalorder %s35_s4, 0 }
  0x17   : > { %s140_s5 = sand.u32 1, %s1211_s11   ;;  %s984_s8 = smul.u32 288, %s1219_s13 }
  0x18   : > { %s983_s6 = smul.u32 288, %s140_s5  ;;  %p1001_p10 = pnand %p1009_p7, %p49_p3 }
  0x19   : > { %s1331_s7 = scalar_select %p38_p9, %s1211_s11, %s40_s30  }
  0x1a   : > { %s144_s15 = scalar_lea.vmem [#allocation2], %s983_s6  ;;  %s152_s23 = scalar_lea.hbm %s1672_s0, %s984_s8 }
  0x1b   : > { %s155_s16 = sshll.u32 %s144_s15, 4  ;;  %s153_s18 = sshll.u32 %s152_s23, 4  ;;  %s156_s16 = int_to_ptr.vmem [resolvable:$true] %s155_s16  ;;  %s154_s18 = int_to_ptr.hbm [resolvable:$true] %s153_s18 }
  0x1c   : > { %s141_s25 = scalar_lea.sflag [#allocation3], %s140_s5  ;;  %s1228_s26 = smov 1152  }
  0x1d   : > { %s1229_s27 = smov 72   ;;  %167 = sbr.rel (%p1304_p8) target bundleno = 260 (0x104), region = 28 }
  0x1e   : > { %1003 = dma.hbm_to_vmem [thread:$0]  (!%p1001_p10), %s154_s18, 4608, %s156_s16, %s141_s25, %s1228_s26, %s1228_s26, %s1229_s27  }
  0x1f   : > { %s1340_s28 = sand.u32 (!%p1304_p8), 1, %s1207_s10  }
  0x20   : > { %s985_s30 = smul.u32 (!%p1304_p8), 288, %s1340_s28  ;;  %s170_s4 = scalar_lea.sflag (!%p1304_p8), [#allocation3], %s1340_s28 }
  0x22   : > { %s1344_s6 = scalar_lea.vmem [#allocation2], %s985_s30 }
  0x23   : > { %1190 = dma.done.wait (%p1291_p4), %s170_s4, 4608  }
  0x24   : > { %1192 = vsyncadd (%p1291_p4), %s170_s4, 4294962688 }
  0x25   : > { %1194 = dma.done.wait (%p1281_p1), [#allocation6], 1440  }
  0x26   : > { %1196 = vsyncadd (%p1281_p1), [#allocation6], 4294965856  ;;  %s986_s24 = smul.u32 1728, %s1340_s28  ;;  %v202_v0 = vld [vmem:[%s1344_s6] sm:$0xff]  ;;  %v203_v1 = vld [vmem:[%s1344_s6 + $0x8] sm:$0xff]  ;;  %vm246_vm0 = vcmask 7168  }
  0x27   : > { %v204_v2 = vld [vmem:[%s1344_s6 + $0x10] sm:$0xff]  ;;  %v205_v3 = vld [vmem:[%s1344_s6 + $0x18] sm:$0xff]  ;;  %v206_v4 = vld [vmem:[%s1344_s6 + $0x20] sm:$0xff]  ;;  %s987_s17 = smul.u32 1728, %s1215_s12  ;;  %s677_s21 = scalar_lea.sflag [#allocation4], %s1340_s28 }
  0x28   : > { %s1358_s19 = scalar_lea.vmem [#allocation7], %s986_s24  ;;  %v207_v5 = vld [vmem:[%s1344_s6 + $0x28] sm:$0xff]  ;;  %v208_v6 = vld [vmem:[%s1344_s6 + $0x30] sm:$0xff]  ;;  %v209_v7 = vld [vmem:[%s1344_s6 + $0x38] sm:$0xff]  ;;  %s1157_s26 = scalar_lea.hbm %s1674_s2, 3456 }
  0x29   : > { %238 = vst [vmem:[%s1358_s19] sm:$0xff] %v202_v0  ;;  %v210_v8 = vld [vmem:[%s1344_s6 + $0x40] sm:$0xff]  ;;  %v211_v9 = vld [vmem:[%s1344_s6 + $0x48] sm:$0xff]  ;;  %v212_v10 = vld [vmem:[%s1344_s6 + $0x50] sm:$0xff]  ;;  %s691_s15 = scalar_lea.hbm %s1674_s2, %s987_s17  ;;  %s692_s12 = sshll.u32 %s1358_s19, 4  ;;  %s693_s12 = int_to_ptr.vmem [resolvable:$true] %s692_s12 }
  0x2a   : > { %239 = vst [vmem:[%s1358_s19 + $0x8] sm:$0xff] %v203_v1  ;;  %v213_v11 = vld [vmem:[%s1344_s6 + $0x58] sm:$0xff]  ;;  %v214_v12 = vld [vmem:[%s1344_s6 + $0x60] sm:$0xff]  ;;  %v215_v13 = vld [vmem:[%s1344_s6 + $0x68] sm:$0xff]  ;;  %s694_s16 = sshll.u32 %s691_s15, 4  ;;  %s695_s16 = int_to_ptr.hbm [resolvable:$true] %s694_s16 }
  0x2b   : > { %240 = vst [vmem:[%s1358_s19 + $0x10] sm:$0xff] %v204_v2  ;;  %v216_v14 = vld [vmem:[%s1344_s6 + $0x70] sm:$0xff]  ;;  %v217_v15 = vld [vmem:[%s1344_s6 + $0x78] sm:$0xff]  ;;  %v218_v16 = vld [vmem:[%s1344_s6 + $0x80] sm:$0xff]  ;;  %s1151_s22 = sshra.s32 %s695_s16, 4  ;;  %s1152_s22 = int_to_ptr.hbm [resolvable:$true] %s1151_s22 }
  0x2c   : > { %241 = vst [vmem:[%s1358_s19 + $0x18] sm:$0xff] %v205_v3  ;;  %v219_v17 = vld [vmem:[%s1344_s6 + $0x88] sm:$0xff]  ;;  %v220_v18 = vld [vmem:[%s1344_s6 + $0x90] sm:$0xff]  ;;  %v221_v19 = vld [vmem:[%s1344_s6 + $0x98] sm:$0xff]  ;;  %s1153_s23 = scalar_lea.hbm %s1152_s22, 1728  ;;  %p1158_p8 = scmp.lt.s32.totalorder %s1152_s22, %s1674_s2 }
  0x2d   : > { %242 = vst [vmem:[%s1358_s19 + $0x20] sm:$0xff] %v206_v4  ;;  %v222_v20 = vld [vmem:[%s1344_s6 + $0xa0] sm:$0xff]  ;;  %v223_v21 = vld [vmem:[%s1344_s6 + $0xa8] sm:$0xff]  ;;  %v224_v22 = vld [vmem:[%s1344_s6 + $0xb0] sm:$0xff]  ;;  %p1154_p1 = scmp.ne.s32.totalorder %s1152_s22, %s1153_s23  ;;  %p1159_p12 = scmp.lt.s32.totalorder %s1157_s26, %s1153_s23 }
  0x2e   : > { %243 = vst [vmem:[%s1358_s19 + $0x28] sm:$0xff] %v207_v5  ;;  %v225_v23 = vld [vmem:[%s1344_s6 + $0xb8] sm:$0xff]  ;;  %v226_v24 = vld [vmem:[%s1344_s6 + $0xc0] sm:$0xff]  ;;  %v227_v25 = vld [vmem:[%s1344_s6 + $0xc8] sm:$0xff] }
  0x2f   : > { %244 = vst [vmem:[%s1358_s19 + $0x30] sm:$0xff] %v208_v6  ;;  %v228_v26 = vld [vmem:[%s1344_s6 + $0xd0] sm:$0xff]  ;;  %v229_v27 = vld [vmem:[%s1344_s6 + $0xd8] sm:$0xff]  ;;  %v230_v28 = vld [vmem:[%s1344_s6 + $0xe0] sm:$0xff]  ;;  %p1155_p2 = pnand %p1154_p1, %p1322_p5  ;;  %p1160_p13 = por %p1159_p12, %p1158_p8 }
  0x30   : > { %245 = vst [vmem:[%s1358_s19 + $0x38] sm:$0xff] %v209_v7  ;;  %v231_v29 = vld [vmem:[%s1344_s6 + $0xe8] sm:$0xff]  ;;  %v232_v30 = vld [vmem:[%s1344_s6 + $0xf0] sm:$0xff]  ;;  %v233_v31 = vld [vmem:[%s1344_s6 + $0xf8] sm:$0xff] }
  0x31   : > { %247 = vst.msk [vmem:[%s1358_s19 + $0x40] sm:$0xff] %vm246_vm0, %v210_v8  ;;  %v234_v32 = vld [vmem:[%s1344_s6 + $0x100] sm:$0xff]  ;;  %v235_v34 = vld [vmem:[%s1344_s6 + $0x108] sm:$0xff]  ;;  %v236_v35 = vld [vmem:[%s1344_s6 + $0x110] sm:$0xff]  ;;  %p1156_p4 = pneg %p1155_p2 }
  0x32   : > { %248 = vst [vmem:[%s1358_s19 + $0x48] sm:$0xff] %v211_v9  ;;  %v275_v33 = vld [vmem:[#allocation5] sm:$0xff]  ;;  %v237_v36 = vld [vmem:[%s1344_s6 + $0x118] sm:$0xff]  ;;  %v277_v45 = vld [vmem:[#allocation5 + $0x9] sm:$0xff] }
  0x33   : > { %249 = vst [vmem:[%s1358_s19 + $0x50] sm:$0xff] %v212_v10  ;;  %v315_v37 = vperm.slane %v275_v33, 0  ;;  %v316_v38 = vperm.slane %v275_v33, 1  ;;  %v317_v39 = vperm.slane %v275_v33, 2  ;;  %v318_v40 = vperm.slane %v275_v33, 3  ;;  %v279_v55 = vld [vmem:[#allocation5 + $0x12] sm:$0xff]  ;;  %p1161_p0 = pnand %p1160_p13, %p1156_p4 }
  0x34   : > { %250 = vst [vmem:[%s1358_s19 + $0x58] sm:$0xff] %v213_v11  ;;  %v319_v41 = vperm.slane %v275_v33, 4  ;;  %v320_v42 = vperm.slane %v275_v33, 5  ;;  %v321_v43 = vperm.slane %v275_v33, 6  ;;  %v322_v44 = vperm.slane %v275_v33, 7  ;;  %v281_v1 = vld [vmem:[#allocation5 + $0x1b] sm:$0xff] }
  0x35   : > { %251 = vst [vmem:[%s1358_s19 + $0x60] sm:$0xff] %v214_v12  ;;  %v1067_v46 = vld [vmem:[#allocation5 + $0x8] ss:$0 sm:$0xff]  ;;  %v324_v47 = vperm.slane %v277_v45, 0  ;;  %v325_v48 = vperm.slane %v277_v45, 1  ;;  %v326_v49 = vperm.slane %v277_v45, 2 }
  0x36   : > { %252 = vst [vmem:[%s1358_s19 + $0x68] sm:$0xff] %v215_v13  ;;  %v327_v50 = vperm.slane %v277_v45, 3  ;;  %v328_v51 = vperm.slane %v277_v45, 4  ;;  %v329_v52 = vperm.slane %v277_v45, 5  ;;  %v330_v53 = vperm.slane %v277_v45, 6  ;;  %v283_v11 = vld [vmem:[#allocation5 + $0x24] sm:$0xff] }
  0x37   : > { %253 = vst [vmem:[%s1358_s19 + $0x70] sm:$0xff] %v216_v14  ;;  %v331_v54 = vperm.slane %v277_v45, 7  ;;  %v1068_v56 = vld [vmem:[#allocation5 + $0x11] ss:$0 sm:$0xff]  ;;  %v333_v57 = vperm.slane %v279_v55, 0  ;;  %v334_v58 = vperm.slane %v279_v55, 1 }
  0x38   : > { %254 = vst [vmem:[%s1358_s19 + $0x78] sm:$0xff] %v217_v15  ;;  %v335_v59 = vperm.slane %v279_v55, 2  ;;  %v336_v60 = vperm.slane %v279_v55, 3  ;;  %v337_v61 = vperm.slane %v279_v55, 4  ;;  %v338_v62 = vperm.slane %v279_v55, 5 }
  0x39   : > { %255 = vst [vmem:[%s1358_s19 + $0x80] sm:$0xff] %v218_v16  ;;  %v339_v63 = vperm.slane %v279_v55, 6  ;;  %v340_v0 = vperm.slane %v279_v55, 7  ;;  %v1069_v2 = vld [vmem:[#allocation5 + $0x1a] ss:$0 sm:$0xff]  ;;  %v342_v3 = vperm.slane %v281_v1, 0 }
  0x3a   : > { %256 = vst.msk [vmem:[%s1358_s19 + $0x88] sm:$0xff] %vm246_vm0, %v219_v17  ;;  %v343_v4 = vperm.slane %v281_v1, 1  ;;  %v344_v5 = vperm.slane %v281_v1, 2  ;;  %v345_v6 = vperm.slane %v281_v1, 3  ;;  %v346_v7 = vperm.slane %v281_v1, 4 }
  0x3b   : > { %257 = vst [vmem:[%s1358_s19 + $0x90] sm:$0xff] %v220_v18  ;;  %v347_v8 = vperm.slane %v281_v1, 5  ;;  %v348_v9 = vperm.slane %v281_v1, 6  ;;  %v349_v10 = vperm.slane %v281_v1, 7  ;;  %v1070_v12 = vld [vmem:[#allocation5 + $0x23] ss:$0 sm:$0xff] }
  0x3c   : > { %258 = vst [vmem:[%s1358_s19 + $0x98] sm:$0xff] %v221_v19  ;;  %v351_v13 = vperm.slane %v283_v11, 0  ;;  %v352_v14 = vperm.slane %v283_v11, 1  ;;  %v353_v15 = vperm.slane %v283_v11, 2  ;;  %v354_v16 = vperm.slane %v283_v11, 3 }
  0x3d   : > { %259 = vst [vmem:[%s1358_s19 + $0xa0] sm:$0xff] %v222_v20  ;;  %v355_v17 = vperm.slane %v283_v11, 4  ;;  %v356_v18 = vperm.slane %v283_v11, 5  ;;  %v357_v19 = vperm.slane %v283_v11, 6  ;;  %v358_v20 = vperm.slane %v283_v11, 7 }
  0x3e   : > { %260 = vst [vmem:[%s1358_s19 + $0xa8] sm:$0xff] %v223_v21  ;;  %v285_v21 = vld [vmem:[#allocation5 + $0x2d] sm:$0xff] }
  0x3f   : > { %261 = vst [vmem:[%s1358_s19 + $0xb0] sm:$0xff] %v224_v22  ;;  %v1071_v22 = vld [vmem:[#allocation5 + $0x2c] ss:$0 sm:$0xff] }
  0x40   : > { %262 = vst [vmem:[%s1358_s19 + $0xb8] sm:$0xff] %v225_v23  ;;  %v360_v23 = vperm.slane %v285_v21, 0 }
  0x41   : > { %263 = vst [vmem:[%s1358_s19 + $0xc0] sm:$0xff] %v226_v24  ;;  %v361_v24 = vperm.slane %v285_v21, 1 }
  0x42   : > { %264 = vst [vmem:[%s1358_s19 + $0xc8] sm:$0xff] %v227_v25  ;;  %v362_v25 = vperm.slane %v285_v21, 2 }
  0x43   : > { %265 = vst.msk [vmem:[%s1358_s19 + $0xd0] sm:$0xff] %vm246_vm0, %v228_v26  ;;  %v363_v26 = vperm.slane %v285_v21, 3 }
  0x44   : > { %266 = vst [vmem:[%s1358_s19 + $0xd8] sm:$0xff] %v229_v27  ;;  %v364_v27 = vperm.slane %v285_v21, 4 }
  0x45   : > { %267 = vst [vmem:[%s1358_s19 + $0xe0] sm:$0xff] %v230_v28  ;;  %v365_v28 = vperm.slane %v285_v21, 5 }
  0x46   : > { %268 = vst [vmem:[%s1358_s19 + $0xe8] sm:$0xff] %v231_v29  ;;  %v366_v29 = vperm.slane %v285_v21, 6 }
  0x47   : > { %269 = vst [vmem:[%s1358_s19 + $0xf0] sm:$0xff] %v232_v30  ;;  %v367_v30 = vperm.slane %v285_v21, 7 }
  0x48   : > { %270 = vst [vmem:[%s1358_s19 + $0xf8] sm:$0xff] %v233_v31  ;;  %v287_v31 = vld [vmem:[#allocation5 + $0x36] sm:$0xff] }
  0x49   : > { %271 = vst [vmem:[%s1358_s19 + $0x100] sm:$0xff] %v234_v32  ;;  %v1072_v32 = vld [vmem:[#allocation5 + $0x35] ss:$0 sm:$0xff]  ;;  %v369_v33 = vperm.slane %v287_v31, 0 }
  0x4a   : > { %272 = vst [vmem:[%s1358_s19 + $0x108] sm:$0xff] %v235_v34  ;;  %v370_v34 = vperm.slane %v287_v31, 1 }
  0x4b   : > { %273 = vst [vmem:[%s1358_s19 + $0x110] sm:$0xff] %v236_v35  ;;  %v371_v35 = vperm.slane %v287_v31, 2 }
  0x4c   : > { %274 = vst.msk [vmem:[%s1358_s19 + $0x118] sm:$0xff] %vm246_vm0, %v237_v36  ;;  %v372_v36 = vperm.slane %v287_v31, 3 }
  0x4d   : > { %800 = vst [vmem:[%s1358_s19 + $0x120] sm:$0xff] %v315_v37 }
  0x4e   : > { %809 = vst [vmem:[%s1358_s19 + $0x168] sm:$0xff] %v315_v37  ;;  %v373_v37 = vperm.slane %v287_v31, 4 }
  0x4f   : > { %801 = vst [vmem:[%s1358_s19 + $0x128] sm:$0xff] %v316_v38 }
  0x50   : > { %810 = vst [vmem:[%s1358_s19 + $0x170] sm:$0xff] %v316_v38  ;;  %v374_v38 = vperm.slane %v287_v31, 5 }
  0x51   : > { %802 = vst [vmem:[%s1358_s19 + $0x130] sm:$0xff] %v317_v39 }
  0x52   : > { %811 = vst [vmem:[%s1358_s19 + $0x178] sm:$0xff] %v317_v39  ;;  %v375_v39 = vperm.slane %v287_v31, 6 }
  0x53   : > { %803 = vst [vmem:[%s1358_s19 + $0x138] sm:$0xff] %v318_v40 }
  0x54   : > { %812 = vst [vmem:[%s1358_s19 + $0x180] sm:$0xff] %v318_v40  ;;  %v376_v40 = vperm.slane %v287_v31, 7 }
  0x55   : > { %804 = vst [vmem:[%s1358_s19 + $0x140] sm:$0xff] %v319_v41 }
  0x56   : > { %813 = vst [vmem:[%s1358_s19 + $0x188] sm:$0xff] %v319_v41  ;;  %v289_v41 = vld [vmem:[#allocation5 + $0x3f] sm:$0xff] }
  0x57   : > { %805 = vst [vmem:[%s1358_s19 + $0x148] sm:$0xff] %v320_v42  ;;  %v380_v45 = vperm.slane %v289_v41, 2 }
  0x58   : > { %814 = vst [vmem:[%s1358_s19 + $0x190] sm:$0xff] %v320_v42  ;;  %v1073_v42 = vld [vmem:[#allocation5 + $0x3e] ss:$0 sm:$0xff] }
  0x59   : > { %806 = vst [vmem:[%s1358_s19 + $0x150] sm:$0xff] %v321_v43 }
  0x5a   : > { %815 = vst [vmem:[%s1358_s19 + $0x198] sm:$0xff] %v321_v43  ;;  %v378_v43 = vperm.slane %v289_v41, 0 }
  0x5b   : > { %807 = vst [vmem:[%s1358_s19 + $0x158] sm:$0xff] %v322_v44 }
  0x5c   : > { %816 = vst [vmem:[%s1358_s19 + $0x1a0] sm:$0xff] %v322_v44  ;;  %v379_v44 = vperm.slane %v289_v41, 1 }
  0x5d   : > { %808 = vst.msk [vmem:[%s1358_s19 + $0x160] sm:$0xff] %vm246_vm0, %v1067_v46 }
  0x5e   : > { %817 = vst.msk [vmem:[%s1358_s19 + $0x1a8] sm:$0xff] %vm246_vm0, %v1067_v46  ;;  %v381_v46 = vperm.slane %v289_v41, 3 }
  0x5f   : > { %818 = vst [vmem:[%s1358_s19 + $0x1b0] sm:$0xff] %v324_v47 }
  0x60   : > { %827 = vst [vmem:[%s1358_s19 + $0x1f8] sm:$0xff] %v324_v47  ;;  %v382_v47 = vperm.slane %v289_v41, 4 }
  0x61   : > { %819 = vst [vmem:[%s1358_s19 + $0x1b8] sm:$0xff] %v325_v48 }
  0x62   : > { %828 = vst [vmem:[%s1358_s19 + $0x200] sm:$0xff] %v325_v48  ;;  %v383_v48 = vperm.slane %v289_v41, 5 }
  0x63   : > { %820 = vst [vmem:[%s1358_s19 + $0x1c0] sm:$0xff] %v326_v49 }
  0x64   : > { %829 = vst [vmem:[%s1358_s19 + $0x208] sm:$0xff] %v326_v49  ;;  %v384_v49 = vperm.slane %v289_v41, 6 }
  0x65   : > { %821 = vst [vmem:[%s1358_s19 + $0x1c8] sm:$0xff] %v327_v50 }
  0x66   : > { %830 = vst [vmem:[%s1358_s19 + $0x210] sm:$0xff] %v327_v50  ;;  %v385_v50 = vperm.slane %v289_v41, 7 }
  0x67   : > { %822 = vst [vmem:[%s1358_s19 + $0x1d0] sm:$0xff] %v328_v51 }
  0x68   : > { %831 = vst [vmem:[%s1358_s19 + $0x218] sm:$0xff] %v328_v51  ;;  %v291_v51 = vld [vmem:[#allocation5 + $0x48] sm:$0xff] }
  0x69   : > { %823 = vst [vmem:[%s1358_s19 + $0x1d8] sm:$0xff] %v329_v52  ;;  %v389_v55 = vperm.slane %v291_v51, 2 }
  0x6a   : > { %832 = vst [vmem:[%s1358_s19 + $0x220] sm:$0xff] %v329_v52  ;;  %v1074_v52 = vld [vmem:[#allocation5 + $0x47] ss:$0 sm:$0xff] }
  0x6b   : > { %824 = vst [vmem:[%s1358_s19 + $0x1e0] sm:$0xff] %v330_v53 }
  0x6c   : > { %833 = vst [vmem:[%s1358_s19 + $0x228] sm:$0xff] %v330_v53  ;;  %v387_v53 = vperm.slane %v291_v51, 0 }
  0x6d   : > { %825 = vst [vmem:[%s1358_s19 + $0x1e8] sm:$0xff] %v331_v54 }
  0x6e   : > { %834 = vst [vmem:[%s1358_s19 + $0x230] sm:$0xff] %v331_v54  ;;  %v388_v54 = vperm.slane %v291_v51, 1 }
  0x6f   : > { %826 = vst.msk [vmem:[%s1358_s19 + $0x1f0] sm:$0xff] %vm246_vm0, %v1068_v56 }
  0x70   : > { %835 = vst.msk [vmem:[%s1358_s19 + $0x238] sm:$0xff] %vm246_vm0, %v1068_v56  ;;  %v390_v56 = vperm.slane %v291_v51, 3 }
  0x71   : > { %836 = vst [vmem:[%s1358_s19 + $0x240] sm:$0xff] %v333_v57 }
  0x72   : > { %845 = vst [vmem:[%s1358_s19 + $0x288] sm:$0xff] %v333_v57  ;;  %v391_v57 = vperm.slane %v291_v51, 4 }
  0x73   : > { %837 = vst [vmem:[%s1358_s19 + $0x248] sm:$0xff] %v334_v58 }
  0x74   : > { %846 = vst [vmem:[%s1358_s19 + $0x290] sm:$0xff] %v334_v58  ;;  %v392_v58 = vperm.slane %v291_v51, 5 }
  0x75   : > { %838 = vst [vmem:[%s1358_s19 + $0x250] sm:$0xff] %v335_v59 }
  0x76   : > { %847 = vst [vmem:[%s1358_s19 + $0x298] sm:$0xff] %v335_v59  ;;  %v393_v59 = vperm.slane %v291_v51, 6 }
  0x77   : > { %839 = vst [vmem:[%s1358_s19 + $0x258] sm:$0xff] %v336_v60 }
  0x78   : > { %848 = vst [vmem:[%s1358_s19 + $0x2a0] sm:$0xff] %v336_v60  ;;  %v394_v60 = vperm.slane %v291_v51, 7 }
  0x79   : > { %840 = vst [vmem:[%s1358_s19 + $0x260] sm:$0xff] %v337_v61 }
  0x7a   : > { %849 = vst [vmem:[%s1358_s19 + $0x2a8] sm:$0xff] %v337_v61  ;;  %v293_v61 = vld [vmem:[#allocation5 + $0x51] sm:$0xff] }
  0x7b   : > { %841 = vst [vmem:[%s1358_s19 + $0x268] sm:$0xff] %v338_v62  ;;  %v398_v1 = vperm.slane %v293_v61, 2 }
  0x7c   : > { %850 = vst [vmem:[%s1358_s19 + $0x2b0] sm:$0xff] %v338_v62  ;;  %v1075_v62 = vld [vmem:[#allocation5 + $0x50] ss:$0 sm:$0xff] }
  0x7d   : > { %842 = vst [vmem:[%s1358_s19 + $0x270] sm:$0xff] %v339_v63 }
  0x7e   : > { %851 = vst [vmem:[%s1358_s19 + $0x2b8] sm:$0xff] %v339_v63  ;;  %v396_v63 = vperm.slane %v293_v61, 0 }
  0x7f   : > { %843 = vst [vmem:[%s1358_s19 + $0x278] sm:$0xff] %v340_v0 }
  0x80   : > { %852 = vst [vmem:[%s1358_s19 + $0x2c0] sm:$0xff] %v340_v0  ;;  %v397_v0 = vperm.slane %v293_v61, 1 }
  0x81   : > { %844 = vst.msk [vmem:[%s1358_s19 + $0x280] sm:$0xff] %vm246_vm0, %v1069_v2 }
  0x82   : > { %853 = vst.msk [vmem:[%s1358_s19 + $0x2c8] sm:$0xff] %vm246_vm0, %v1069_v2  ;;  %v399_v2 = vperm.slane %v293_v61, 3 }
  0x83   : > { %854 = vst [vmem:[%s1358_s19 + $0x2d0] sm:$0xff] %v342_v3 }
  0x84   : > { %863 = vst [vmem:[%s1358_s19 + $0x318] sm:$0xff] %v342_v3  ;;  %v400_v3 = vperm.slane %v293_v61, 4 }
  0x85   : > { %855 = vst [vmem:[%s1358_s19 + $0x2d8] sm:$0xff] %v343_v4 }
  0x86   : > { %864 = vst [vmem:[%s1358_s19 + $0x320] sm:$0xff] %v343_v4  ;;  %v401_v4 = vperm.slane %v293_v61, 5 }
  0x87   : > { %856 = vst [vmem:[%s1358_s19 + $0x2e0] sm:$0xff] %v344_v5 }
  0x88   : > { %865 = vst [vmem:[%s1358_s19 + $0x328] sm:$0xff] %v344_v5  ;;  %v402_v5 = vperm.slane %v293_v61, 6 }
  0x89   : > { %857 = vst [vmem:[%s1358_s19 + $0x2e8] sm:$0xff] %v345_v6 }
  0x8a   : > { %866 = vst [vmem:[%s1358_s19 + $0x330] sm:$0xff] %v345_v6  ;;  %v403_v6 = vperm.slane %v293_v61, 7 }
  0x8b   : > { %858 = vst [vmem:[%s1358_s19 + $0x2f0] sm:$0xff] %v346_v7 }
  0x8c   : > { %867 = vst [vmem:[%s1358_s19 + $0x338] sm:$0xff] %v346_v7  ;;  %v1076_v7 = vld [vmem:[#allocation5 + $0x59] ss:$0 sm:$0xff] }
  0x8d   : > { %859 = vst [vmem:[%s1358_s19 + $0x2f8] sm:$0xff] %v347_v8 }
  0x8e   : > { %868 = vst [vmem:[%s1358_s19 + $0x340] sm:$0xff] %v347_v8 }
  0x8f   : > { %860 = vst [vmem:[%s1358_s19 + $0x300] sm:$0xff] %v348_v9 }
  0x90   : > { %869 = vst [vmem:[%s1358_s19 + $0x348] sm:$0xff] %v348_v9 }
  0x91   : > { %861 = vst [vmem:[%s1358_s19 + $0x308] sm:$0xff] %v349_v10 }
  0x92   : > { %870 = vst [vmem:[%s1358_s19 + $0x350] sm:$0xff] %v349_v10 }
  0x93   : > { %862 = vst.msk [vmem:[%s1358_s19 + $0x310] sm:$0xff] %vm246_vm0, %v1070_v12 }
  0x94   : > { %871 = vst.msk [vmem:[%s1358_s19 + $0x358] sm:$0xff] %vm246_vm0, %v1070_v12 }
  0x95   : > { %872 = vst [vmem:[%s1358_s19 + $0x360] sm:$0xff] %v351_v13 }
  0x96   : > { %881 = vst [vmem:[%s1358_s19 + $0x3a8] sm:$0xff] %v351_v13 }
  0x97   : > { %873 = vst [vmem:[%s1358_s19 + $0x368] sm:$0xff] %v352_v14 }
  0x98   : > { %882 = vst [vmem:[%s1358_s19 + $0x3b0] sm:$0xff] %v352_v14 }
  0x99   : > { %874 = vst [vmem:[%s1358_s19 + $0x370] sm:$0xff] %v353_v15 }
  0x9a   : > { %883 = vst [vmem:[%s1358_s19 + $0x3b8] sm:$0xff] %v353_v15 }
  0x9b   : > { %875 = vst [vmem:[%s1358_s19 + $0x378] sm:$0xff] %v354_v16 }
  0x9c   : > { %884 = vst [vmem:[%s1358_s19 + $0x3c0] sm:$0xff] %v354_v16 }
  0x9d   : > { %876 = vst [vmem:[%s1358_s19 + $0x380] sm:$0xff] %v355_v17 }
  0x9e   : > { %885 = vst [vmem:[%s1358_s19 + $0x3c8] sm:$0xff] %v355_v17 }
  0x9f   : > { %877 = vst [vmem:[%s1358_s19 + $0x388] sm:$0xff] %v356_v18 }
  0xa0   : > { %886 = vst [vmem:[%s1358_s19 + $0x3d0] sm:$0xff] %v356_v18 }
  0xa1   : > { %878 = vst [vmem:[%s1358_s19 + $0x390] sm:$0xff] %v357_v19 }
  0xa2   : > { %887 = vst [vmem:[%s1358_s19 + $0x3d8] sm:$0xff] %v357_v19 }
  0xa3   : > { %879 = vst [vmem:[%s1358_s19 + $0x398] sm:$0xff] %v358_v20 }
  0xa4   : > { %888 = vst [vmem:[%s1358_s19 + $0x3e0] sm:$0xff] %v358_v20 }
  0xa5   : > { %880 = vst.msk [vmem:[%s1358_s19 + $0x3a0] sm:$0xff] %vm246_vm0, %v1071_v22 }
  0xa6   : > { %889 = vst.msk [vmem:[%s1358_s19 + $0x3e8] sm:$0xff] %vm246_vm0, %v1071_v22 }
  0xa7   : > { %890 = vst [vmem:[%s1358_s19 + $0x3f0] sm:$0xff] %v360_v23 }
  0xa8   : > { %899 = vst [vmem:[%s1358_s19 + $0x438] sm:$0xff] %v360_v23 }
  0xa9   : > { %891 = vst [vmem:[%s1358_s19 + $0x3f8] sm:$0xff] %v361_v24 }
  0xaa   : > { %900 = vst [vmem:[%s1358_s19 + $0x440] sm:$0xff] %v361_v24 }
  0xab   : > { %892 = vst [vmem:[%s1358_s19 + $0x400] sm:$0xff] %v362_v25 }
  0xac   : > { %901 = vst [vmem:[%s1358_s19 + $0x448] sm:$0xff] %v362_v25 }
  0xad   : > { %893 = vst [vmem:[%s1358_s19 + $0x408] sm:$0xff] %v363_v26 }
  0xae   : > { %902 = vst [vmem:[%s1358_s19 + $0x450] sm:$0xff] %v363_v26 }
  0xaf   : > { %894 = vst [vmem:[%s1358_s19 + $0x410] sm:$0xff] %v364_v27 }
  0xb0   : > { %903 = vst [vmem:[%s1358_s19 + $0x458] sm:$0xff] %v364_v27 }
  0xb1   : > { %895 = vst [vmem:[%s1358_s19 + $0x418] sm:$0xff] %v365_v28 }
  0xb2   : > { %904 = vst [vmem:[%s1358_s19 + $0x460] sm:$0xff] %v365_v28 }
  0xb3   : > { %896 = vst [vmem:[%s1358_s19 + $0x420] sm:$0xff] %v366_v29 }
  0xb4   : > { %905 = vst [vmem:[%s1358_s19 + $0x468] sm:$0xff] %v366_v29 }
  0xb5   : > { %897 = vst [vmem:[%s1358_s19 + $0x428] sm:$0xff] %v367_v30 }
  0xb6   : > { %906 = vst [vmem:[%s1358_s19 + $0x470] sm:$0xff] %v367_v30 }
  0xb7   : > { %898 = vst.msk [vmem:[%s1358_s19 + $0x430] sm:$0xff] %vm246_vm0, %v1072_v32 }
  0xb8   : > { %907 = vst.msk [vmem:[%s1358_s19 + $0x478] sm:$0xff] %vm246_vm0, %v1072_v32 }
  0xb9   : > { %908 = vst [vmem:[%s1358_s19 + $0x480] sm:$0xff] %v369_v33 }
  0xba   : > { %917 = vst [vmem:[%s1358_s19 + $0x4c8] sm:$0xff] %v369_v33 }
  0xbb   : > { %909 = vst [vmem:[%s1358_s19 + $0x488] sm:$0xff] %v370_v34 }
  0xbc   : > { %918 = vst [vmem:[%s1358_s19 + $0x4d0] sm:$0xff] %v370_v34 }
  0xbd   : > { %910 = vst [vmem:[%s1358_s19 + $0x490] sm:$0xff] %v371_v35 }
  0xbe   : > { %919 = vst [vmem:[%s1358_s19 + $0x4d8] sm:$0xff] %v371_v35 }
  0xbf   : > { %911 = vst [vmem:[%s1358_s19 + $0x498] sm:$0xff] %v372_v36 }
  0xc0   : > { %920 = vst [vmem:[%s1358_s19 + $0x4e0] sm:$0xff] %v372_v36 }
  0xc1   : > { %912 = vst [vmem:[%s1358_s19 + $0x4a0] sm:$0xff] %v373_v37 }
  0xc2   : > { %921 = vst [vmem:[%s1358_s19 + $0x4e8] sm:$0xff] %v373_v37 }
  0xc3   : > { %913 = vst [vmem:[%s1358_s19 + $0x4a8] sm:$0xff] %v374_v38 }
  0xc4   : > { %922 = vst [vmem:[%s1358_s19 + $0x4f0] sm:$0xff] %v374_v38 }
  0xc5   : > { %914 = vst [vmem:[%s1358_s19 + $0x4b0] sm:$0xff] %v375_v39 }
  0xc6   : > { %923 = vst [vmem:[%s1358_s19 + $0x4f8] sm:$0xff] %v375_v39 }
  0xc7   : > { %915 = vst [vmem:[%s1358_s19 + $0x4b8] sm:$0xff] %v376_v40 }
  0xc8   : > { %924 = vst [vmem:[%s1358_s19 + $0x500] sm:$0xff] %v376_v40 }
  0xc9   : > { %916 = vst.msk [vmem:[%s1358_s19 + $0x4c0] sm:$0xff] %vm246_vm0, %v1073_v42 }
  0xca   : > { %925 = vst.msk [vmem:[%s1358_s19 + $0x508] sm:$0xff] %vm246_vm0, %v1073_v42 }
  0xcb   : > { %926 = vst [vmem:[%s1358_s19 + $0x510] sm:$0xff] %v378_v43 }
  0xcc   : > { %935 = vst [vmem:[%s1358_s19 + $0x558] sm:$0xff] %v378_v43 }
  0xcd   : > { %927 = vst [vmem:[%s1358_s19 + $0x518] sm:$0xff] %v379_v44 }
  0xce   : > { %936 = vst [vmem:[%s1358_s19 + $0x560] sm:$0xff] %v379_v44 }
  0xcf   : > { %928 = vst [vmem:[%s1358_s19 + $0x520] sm:$0xff] %v380_v45 }
  0xd0   : > { %937 = vst [vmem:[%s1358_s19 + $0x568] sm:$0xff] %v380_v45 }
  0xd1   : > { %929 = vst [vmem:[%s1358_s19 + $0x528] sm:$0xff] %v381_v46 }
  0xd2   : > { %938 = vst [vmem:[%s1358_s19 + $0x570] sm:$0xff] %v381_v46 }
  0xd3   : > { %930 = vst [vmem:[%s1358_s19 + $0x530] sm:$0xff] %v382_v47 }
  0xd4   : > { %939 = vst [vmem:[%s1358_s19 + $0x578] sm:$0xff] %v382_v47 }
  0xd5   : > { %931 = vst [vmem:[%s1358_s19 + $0x538] sm:$0xff] %v383_v48 }
  0xd6   : > { %940 = vst [vmem:[%s1358_s19 + $0x580] sm:$0xff] %v383_v48 }
  0xd7   : > { %932 = vst [vmem:[%s1358_s19 + $0x540] sm:$0xff] %v384_v49 }
  0xd8   : > { %941 = vst [vmem:[%s1358_s19 + $0x588] sm:$0xff] %v384_v49 }
  0xd9   : > { %933 = vst [vmem:[%s1358_s19 + $0x548] sm:$0xff] %v385_v50 }
  0xda   : > { %942 = vst [vmem:[%s1358_s19 + $0x590] sm:$0xff] %v385_v50 }
  0xdb   : > { %934 = vst.msk [vmem:[%s1358_s19 + $0x550] sm:$0xff] %vm246_vm0, %v1074_v52 }
  0xdc   : > { %943 = vst.msk [vmem:[%s1358_s19 + $0x598] sm:$0xff] %vm246_vm0, %v1074_v52 }
  0xdd   : > { %944 = vst [vmem:[%s1358_s19 + $0x5a0] sm:$0xff] %v387_v53 }
  0xde   : > { %953 = vst [vmem:[%s1358_s19 + $0x5e8] sm:$0xff] %v387_v53 }
  0xdf   : > { %945 = vst [vmem:[%s1358_s19 + $0x5a8] sm:$0xff] %v388_v54 }
  0xe0   : > { %954 = vst [vmem:[%s1358_s19 + $0x5f0] sm:$0xff] %v388_v54 }
  0xe1   : > { %946 = vst [vmem:[%s1358_s19 + $0x5b0] sm:$0xff] %v389_v55 }
  0xe2   : > { %955 = vst [vmem:[%s1358_s19 + $0x5f8] sm:$0xff] %v389_v55 }
  0xe3   : > { %947 = vst [vmem:[%s1358_s19 + $0x5b8] sm:$0xff] %v390_v56 }
  0xe4   : > { %956 = vst [vmem:[%s1358_s19 + $0x600] sm:$0xff] %v390_v56 }
  0xe5   : > { %948 = vst [vmem:[%s1358_s19 + $0x5c0] sm:$0xff] %v391_v57 }
  0xe6   : > { %957 = vst [vmem:[%s1358_s19 + $0x608] sm:$0xff] %v391_v57 }
  0xe7   : > { %949 = vst [vmem:[%s1358_s19 + $0x5c8] sm:$0xff] %v392_v58 }
  0xe8   : > { %958 = vst [vmem:[%s1358_s19 + $0x610] sm:$0xff] %v392_v58 }
  0xe9   : > { %950 = vst [vmem:[%s1358_s19 + $0x5d0] sm:$0xff] %v393_v59 }
  0xea   : > { %959 = vst [vmem:[%s1358_s19 + $0x618] sm:$0xff] %v393_v59 }
  0xeb   : > { %951 = vst [vmem:[%s1358_s19 + $0x5d8] sm:$0xff] %v394_v60 }
  0xec   : > { %960 = vst [vmem:[%s1358_s19 + $0x620] sm:$0xff] %v394_v60 }
  0xed   : > { %952 = vst.msk [vmem:[%s1358_s19 + $0x5e0] sm:$0xff] %vm246_vm0, %v1075_v62 }
  0xee   : > { %961 = vst.msk [vmem:[%s1358_s19 + $0x628] sm:$0xff] %vm246_vm0, %v1075_v62 }
  0xef   : > { %962 = vst [vmem:[%s1358_s19 + $0x630] sm:$0xff] %v396_v63 }
  0xf0   : > { %971 = vst [vmem:[%s1358_s19 + $0x678] sm:$0xff] %v396_v63 }
  0xf1   : > { %963 = vst [vmem:[%s1358_s19 + $0x638] sm:$0xff] %v397_v0 }
  0xf2   : > { %972 = vst [vmem:[%s1358_s19 + $0x680] sm:$0xff] %v397_v0 }
  0xf3   : > { %964 = vst [vmem:[%s1358_s19 + $0x640] sm:$0xff] %v398_v1 }
  0xf4   : > { %973 = vst [vmem:[%s1358_s19 + $0x688] sm:$0xff] %v398_v1 }
  0xf5   : > { %965 = vst [vmem:[%s1358_s19 + $0x648] sm:$0xff] %v399_v2 }
  0xf6   : > { %974 = vst [vmem:[%s1358_s19 + $0x690] sm:$0xff] %v399_v2 }
  0xf7   : > { %966 = vst [vmem:[%s1358_s19 + $0x650] sm:$0xff] %v400_v3 }
  0xf8   : > { %975 = vst [vmem:[%s1358_s19 + $0x698] sm:$0xff] %v400_v3 }
  0xf9   : > { %967 = vst [vmem:[%s1358_s19 + $0x658] sm:$0xff] %v401_v4 }
  0xfa   : > { %976 = vst [vmem:[%s1358_s19 + $0x6a0] sm:$0xff] %v401_v4 }
  0xfb   : > { %968 = vst [vmem:[%s1358_s19 + $0x660] sm:$0xff] %v402_v5 }
  0xfc   : > { %977 = vst [vmem:[%s1358_s19 + $0x6a8] sm:$0xff] %v402_v5 }
  0xfd   : > { %969 = vst [vmem:[%s1358_s19 + $0x668] sm:$0xff] %v403_v6 }
  0xfe   : > { %978 = vst [vmem:[%s1358_s19 + $0x6b0] sm:$0xff] %v403_v6 }
  0xff   : > { %970 = vst.msk [vmem:[%s1358_s19 + $0x670] sm:$0xff] %vm246_vm0, %v1076_v7 }
 0x100   : > { %979 = vst.msk [vmem:[%s1358_s19 + $0x6b8] sm:$0xff] %vm246_vm0, %v1076_v7 }
 0x101   : > { %1164 = shalt.err (!%p1161_p0)
}
 0x102   : > { %s1230_s28 = smov 1152   ;;  %s1231_s4 = smov 72  }
 0x103   : > { %994 = dma.vmem_to_hbm [thread:$0]  (%p1322_p5), %s693_s12, 27648, %s695_s16, %s677_s21, %s1230_s28, %s1230_s28, %s1231_s4  }
 0x104 PF: > { %s709_s6 = sand.u32 1, %s1203_s9   ;;  %p1005_p3 = pnand %p796_p11, %p1296_p6 }
 0x105   : > { %s710_s24 = scalar_lea.sflag [#allocation4], %s709_s6 }
 0x106   : > { %p1006_p7 = pneg %p1005_p3 }
 0x108   : > { %1198 = dma.done.wait (%p1006_p7), %s710_s24, 27648  }
 0x109   : > { %1200 = vsyncadd (%p1006_p7), %s710_s24, 4294939648  ;;  %s19_s14 = sadd.s32 1, %s1223_s14   ;;  %s1681_s9 = smov %s1207_s10 }
 0x10a   : > { %p16_p9 = scmp.ge.s32.totalorder %s19_s14, 4   ;;  %s1682_s10 = smov %s1211_s11 }
 0x10b   : > { %s1683_s11 = smov %s1331_s7  ;;  %s1684_s12 = smov %s1219_s13 }
 0x10c   : > { %s1685_s13 = smov %s1687_s29  ;;  %18 = sbr.rel (!%p16_p9) target bundleno = 7 (0x7), region = 78 }
 0x111   :  { %716 = vsyncpa [#allocation3], 1 }
 0x112   :  { %718 = vsyncpa [#allocation3 + $0x1], 1 }
 0x113   :  { %719 = vsyncpa [#allocation6], 1 }
 0x114   :  { %720 = vsyncpa [#allocation4], 1 }
 0x115   :  { %722 = vsyncpa [#allocation4 + $0x1], 1 }

</bundles_post_ra>
